<compile_context>
chip_gen: v7x
topology: tpu7x:2x2x1
jax: 0.10.0
libtpu: 0.0.40
codegen_flags: <defaults>
</compile_context>

<pallas_src>
import jax
import jax.numpy as jnp
from jax.experimental import pallas as pl
from jax.experimental.pallas import tpu as pltpu

BN_EPS = 1e-5


def _round_up(x, m):
    return (x + m - 1) // m * m


def _vmem_block_bytes(shape, dtype):
    """Approximate VMEM footprint of one block after (sublane, lane) tile padding."""
    shape = tuple(shape)
    if len(shape) < 2:
        shape = (1,) * (2 - len(shape)) + shape
    itemsize = jnp.dtype(dtype).itemsize
    sub = 8 * max(1, 4 // itemsize)
    rows = _round_up(shape[-2], sub)
    lanes = _round_up(shape[-1], 128)
    outer = 1
    for d in shape[:-2]:
        outer *= d
    return outer * rows * lanes * itemsize


def _make_conv_tile_fn(taps, Ho, Wp, Cin):
    """Returns fn(x_ref, w_ref) -> f32 (Ho*Wp, CO_P) conv (no bias), 9 tap matmuls."""
    Ms = Ho * Wp

    def conv_tile(x_ref, w_ref):
        # Load the four parity planes once each: (Hh, Wh, Cin).
        planes_v = [x_ref[0, p] for p in range(4)]
        acc = None
        for t, (p, dh, dw) in enumerate(taps):
            xt = planes_v[p][dh:dh + Ho, dw:dw + Wp, :]      # contiguous shifted slice
            xt = xt.reshape(Ms, Cin)                         # layout-trivial (Wp % sublane == 0)
            d = jnp.dot(xt, w_ref[t], preferred_element_type=jnp.float32)
            acc = d if acc is None else acc + d
        return acc                                           # (Ms, CO_P) f32

    return conv_tile


def _make_stats_kernel(taps, Ho, Wp, Wo, Cin):
    """Pass 1: per-sample partial sum / sum-of-squares of conv (no bias needed)."""
    conv_tile = _make_conv_tile_fn(taps, Ho, Wp, Cin)
    Ms = Ho * Wp

    def stats_kernel(x_ref, w_ref, sum_ref, ssq_ref):
        conv = conv_tile(x_ref, w_ref)
        if Wp > Wo:  # only when Wo isn't sublane-aligned: padded output columns can
            # see real data through the stride-2 halo, so exclude them from the stats.
            col = jax.lax.broadcasted_iota(jnp.int32, (Ms, 1), 0) % Wp
            conv = jnp.where(col < Wo, conv, 0.0)
        sum_ref[0] = jnp.sum(conv, axis=0, keepdims=True)
        ssq_ref[0] = jnp.sum(conv * conv, axis=0, keepdims=True)

    return stats_kernel


def _make_norm_kernel(taps, Ho, Wp, Cin):
    """Pass 2: recompute conv tile, fused BN scale/shift + ReLU, narrow store."""
    conv_tile = _make_conv_tile_fn(taps, Ho, Wp, Cin)

    def norm_kernel(x_ref, w_ref, scale_ref, shift_ref, o_ref):
        conv = conv_tile(x_ref, w_ref)
        y = conv * scale_ref[...] + shift_ref[...]
        o_ref[0] = jnp.maximum(y, 0.0).astype(o_ref.dtype)

    return norm_kernel


def conv_bn_relu(x, conv_w, conv_b, gamma, beta, *, mxu_dtype=jnp.float32):
    """x: (N, Cin, H, W) f32.  conv_w: (Cout, Cin, 3, 3).  Returns NCHW f32.

    conv_b is accepted for API parity but is mathematically irrelevant here: with
    training-mode BatchNorm the conv bias cancels exactly against the batch mean.
    """
    del conv_b  # cancels against the batch mean (training-mode BN).
    N, Cin, H, W = x.shape
    Cout = conv_w.shape[0]
    Ho = (H - 1) // 2 + 1                     # k=3, s=2, p=1
    Wo = (W - 1) // 2 + 1

    itemsize = jnp.dtype(mxu_dtype).itemsize
    sub = 8 * max(1, 4 // itemsize)           # 8 rows (f32) / 16 rows (bf16) packing
    Wp = _round_up(Wo, sub)                   # padded output width -> trivial reshape
    Hh, Wh = Ho + 1, Wp + 1                   # parity-plane sizes incl. +1 halo
    Ms = Ho * Wp
    CO_P = _round_up(Cout, 8)                 # write only what is needed (not 128)

    # ---- Parity-plane (space-to-depth) input: in-kernel taps become plain slices ----
    x_nhwc = jnp.transpose(x, (0, 2, 3, 1))                              # (N, H, W, C)
    canvas = jnp.pad(x_nhwc, ((0, 0),
                              (1, 2 * Hh - H - 1),
                              (1, 2 * Wh - W - 1),
                              (0, 0)))                                    # zero pad
    planes = canvas.reshape(N, Hh, 2, Wh, 2, Cin).transpose(0, 2, 4, 1, 3, 5)
    planes = planes.reshape(N, 4, Hh, Wh, Cin).astype(mxu_dtype)
    # planes[n, ph*2+pw, he, we, c] == canvas[n, 2*he+ph, 2*we+pw, c]

    # Per-tap weights: (kh*3+kw, Cin, CO_P).
    w_taps = jnp.transpose(conv_w, (2, 3, 1, 0)).reshape(9, Cin, Cout)
    w_taps = jnp.pad(w_taps, ((0, 0), (0, 0), (0, CO_P - Cout))).astype(mxu_dtype)

    # tap (kh, kw) -> (plane index, dh, dw): input row 2ho+kh = 2*(ho+kh//2) + kh%2.
    taps = [((kh % 2) * 2 + (kw % 2), kh // 2, kw // 2)
            for kh in range(3) for kw in range(3)]

    # ---- Generation-aware VMEM budget (block sizes are per-sample here) ----
    in_blk = _vmem_block_bytes((1, 4, Hh, Wh, Cin), mxu_dtype)
    w_blk = _vmem_block_bytes((9, Cin, CO_P), mxu_dtype)
    out_blk = _vmem_block_bytes((1, Ms, CO_P), jnp.float32)
    acc_blk = _vmem_block_bytes((Ms, CO_P), jnp.float32)
    need = 2 * (in_blk + w_blk + out_blk) + 4 * acc_blk + (4 << 20)
    try:
        vmem_cap = pltpu.get_tpu_info().vmem_capacity_bytes
    except Exception:
        vmem_cap = 64 << 20                   # conservative: v7x per-core VMEM
    vmem_limit = int(min(max(32 << 20, need), int(vmem_cap * 0.75)))

    cparams = pltpu.CompilerParams(dimension_semantics=("parallel",),
                                   vmem_limit_bytes=vmem_limit)

    x_spec = pl.BlockSpec((1, 4, Hh, Wh, Cin), lambda n: (n, 0, 0, 0, 0))
    w_spec = pl.BlockSpec((9, Cin, CO_P), lambda n: (0, 0, 0))

    # ---- Pass 1: per-sample partial statistics (parallel across samples/cores) ----
    sums, ssqs = pl.pallas_call(
        _make_stats_kernel(taps, Ho, Wp, Wo, Cin),
        out_shape=(jax.ShapeDtypeStruct((N, 1, CO_P), jnp.float32),
                   jax.ShapeDtypeStruct((N, 1, CO_P), jnp.float32)),
        grid=(N,),
        in_specs=[x_spec, w_spec],
        out_specs=(pl.BlockSpec((1, 1, CO_P), lambda n: (n, 0, 0)),
                   pl.BlockSpec((1, 1, CO_P), lambda n: (n, 0, 0))),
        compiler_params=cparams,
    )(planes, w_taps)

    # Tiny f32 finalize: bias-free (bias cancels), biased variance, eps inside rsqrt.
    cnt = jnp.float32(N * Ho * Wo)
    sum_nb = jnp.sum(sums, axis=0)            # (1, CO_P)
    ssq_nb = jnp.sum(ssqs, axis=0)
    mean_nb = sum_nb / cnt
    var = jnp.maximum(ssq_nb / cnt - mean_nb * mean_nb, 0.0)
    inv_std = jax.lax.rsqrt(var + BN_EPS)
    gamma_p = jnp.pad(gamma.reshape(1, Cout), ((0, 0), (0, CO_P - Cout))).astype(jnp.float32)
    beta_p = jnp.pad(beta.reshape(1, Cout), ((0, 0), (0, CO_P - Cout))).astype(jnp.float32)
    scale = gamma_p * inv_std                 # y = conv*scale + shift
    shift = beta_p - mean_nb * scale          # conv bias cancelled against batch mean

    # ---- Pass 2: recompute conv tile, fused scale/shift + ReLU, narrow writeback ----
    out = pl.pallas_call(
        _make_norm_kernel(taps, Ho, Wp, Cin),
        out_shape=jax.ShapeDtypeStruct((N, Ms, CO_P), jnp.float32),
        grid=(N,),
        in_specs=[x_spec, w_spec,
                  pl.BlockSpec((1, CO_P), lambda n: (0, 0)),
                  pl.BlockSpec((1, CO_P), lambda n: (0, 0))],
        out_specs=pl.BlockSpec((1, Ms, CO_P), lambda n: (n, 0, 0)),
        compiler_params=cparams,
    )(planes, w_taps, scale, shift)

    out = out.reshape(N, Ho, Wp, CO_P)[:, :, :Wo, :Cout]
    return jnp.transpose(out, (0, 3, 1, 2))   # back to NCHW to match the PyTorch module


def _reference(x, conv_w, conv_b, gamma, beta):
    """Pure-JAX reference matching PyTorch training-mode forward."""
    y = jax.lax.conv_general_dilated(
        x, conv_w, window_strides=(2, 2), padding=((1, 1), (1, 1)),
        dimension_numbers=("NCHW", "OIHW", "NCHW"))
    y = y + conv_b.reshape(1, -1, 1, 1)
    mean = jnp.mean(y, axis=(0, 2, 3), keepdims=True)
    var = jnp.mean((y - mean) ** 2, axis=(0, 2, 3), keepdims=True)
    y = (y - mean) * jax.lax.rsqrt(var + BN_EPS)
    y = y * gamma.reshape(1, -1, 1, 1) + beta.reshape(1, -1, 1, 1)
    return jnp.maximum(y, 0.0)


if __name__ == "__main__":
    # Small shapes: batch=2, in_channels=4, out_channels=8, spatial=16 (-> 8 after stride 2)
    N, Cin, Cout, H, W = 2, 4, 8, 16, 16

    key = jax.random.PRNGKey(0)
    kx, kw, kb, kg, kbeta = jax.random.split(key, 5)
    x = jax.random.normal(kx, (N, Cin, H, W), dtype=jnp.float32)
    conv_w = jax.random.normal(kw, (Cout, Cin, 3, 3), dtype=jnp.float32) * 0.1
    conv_b = jax.random.normal(kb, (Cout,), dtype=jnp.float32) * 0.1
    gamma = 1.0 + 0.1 * jax.random.normal(kg, (Cout,), dtype=jnp.float32)
    beta = 0.1 * jax.random.normal(kbeta, (Cout,), dtype=jnp.float32)

    ref = _reference(x, conv_w, conv_b, gamma, beta)

    # Full-precision MXU path.
    out = conv_bn_relu(x, conv_w, conv_b, gamma, beta, mxu_dtype=jnp.float32)
    out = jax.block_until_ready(out)
    assert out.shape == (N, Cout, H // 2, W // 2), out.shape
    assert jnp.allclose(out, ref, atol=5e-4, rtol=5e-4), \
        float(jnp.max(jnp.abs(out - ref)))

    # Reduced-precision MXU path (bf16 inputs, f32 accumulation) — also valid on v5e.
    out_bf16 = conv_bn_relu(x, conv_w, conv_b, gamma, beta, mxu_dtype=jnp.bfloat16)
    out_bf16 = jax.block_until_ready(out_bf16)
    assert out_bf16.shape == (N, Cout, H // 2, W // 2), out_bf16.shape
    assert jnp.allclose(out_bf16, ref, atol=5e-2, rtol=5e-2), \
        float(jnp.max(jnp.abs(out_bf16 - ref)))

    print("KERNEL_OK")
</pallas_src>

<mosaic_0001>
module attributes {stable_mosaic.version = 11 : i64} {
  func.func @stats_kernel(%arg0: i32, %arg1: memref<1x4x9x9x4xf32, #tpu.memory_space<vmem>>, %arg2: memref<9x4x8xf32, #tpu.memory_space<vmem>>, %arg3: memref<1x1x8xf32, #tpu.memory_space<vmem>>, %arg4: memref<1x1x8xf32, #tpu.memory_space<vmem>>) attributes {dimension_semantics = [#tpu.dimension_semantics<parallel>], iteration_bounds = array<i64: 2>, scalar_prefetch = 0 : i64, scratch_operands = 0 : i64, tpu.core_type = #tpu.core_type<tc>, window_params = [{transform_indices = @transform_0, window_bounds = array<i64: 1, 4, 9, 9, 4>}, {pipeline_mode = #tpu.pipeline_mode<synchronous>, transform_indices = @transform_1, window_bounds = array<i64: 9, 4, 8>}, {transform_indices = @transform_2, window_bounds = array<i64: 1, 1, 8>}, {transform_indices = @transform_3, window_bounds = array<i64: 1, 1, 8>}]} {
    %c0 = arith.constant 0 : index
    %c0_0 = arith.constant 0 : index
    %c0_1 = arith.constant 0 : index
    %c0_2 = arith.constant 0 : index
    %c0_3 = arith.constant 0 : index
    %0 = vector.load %arg1[%c0, %c0_0, %c0_1, %c0_2, %c0_3] : memref<1x4x9x9x4xf32, #tpu.memory_space<vmem>>, vector<1x1x9x9x4xf32>
    %1 = vector.shape_cast %0 : vector<1x1x9x9x4xf32> to vector<9x9x4xf32>
    %c0_4 = arith.constant 0 : index
    %c1 = arith.constant 1 : index
    %c0_5 = arith.constant 0 : index
    %c0_6 = arith.constant 0 : index
    %c0_7 = arith.constant 0 : index
    %2 = vector.load %arg1[%c0_4, %c1, %c0_5, %c0_6, %c0_7] : memref<1x4x9x9x4xf32, #tpu.memory_space<vmem>>, vector<1x1x9x9x4xf32>
    %3 = vector.shape_cast %2 : vector<1x1x9x9x4xf32> to vector<9x9x4xf32>
    %c0_8 = arith.constant 0 : index
    %c2 = arith.constant 2 : index
    %c0_9 = arith.constant 0 : index
    %c0_10 = arith.constant 0 : index
    %c0_11 = arith.constant 0 : index
    %4 = vector.load %arg1[%c0_8, %c2, %c0_9, %c0_10, %c0_11] : memref<1x4x9x9x4xf32, #tpu.memory_space<vmem>>, vector<1x1x9x9x4xf32>
    %5 = vector.shape_cast %4 : vector<1x1x9x9x4xf32> to vector<9x9x4xf32>
    %c0_12 = arith.constant 0 : index
    %c3 = arith.constant 3 : index
    %c0_13 = arith.constant 0 : index
    %c0_14 = arith.constant 0 : index
    %c0_15 = arith.constant 0 : index
    %6 = vector.load %arg1[%c0_12, %c3, %c0_13, %c0_14, %c0_15] : memref<1x4x9x9x4xf32, #tpu.memory_space<vmem>>, vector<1x1x9x9x4xf32>
    %7 = vector.shape_cast %6 : vector<1x1x9x9x4xf32> to vector<9x9x4xf32>
    %8 = vector.extract_strided_slice %1 {offsets = [0, 0, 0], sizes = [8, 8, 4], strides = [1, 1, 1]} : vector<9x9x4xf32> to vector<8x8x4xf32>
    %9 = vector.shape_cast %8 : vector<8x8x4xf32> to vector<64x4xf32>
    %c0_16 = arith.constant 0 : index
    %c0_17 = arith.constant 0 : index
    %c0_18 = arith.constant 0 : index
    %10 = vector.load %arg2[%c0_16, %c0_17, %c0_18] : memref<9x4x8xf32, #tpu.memory_space<vmem>>, vector<1x4x8xf32>
    %11 = vector.shape_cast %10 : vector<1x4x8xf32> to vector<4x8xf32>
    %cst = arith.constant dense<0.000000e+00> : vector<64x8xf32>
    %12 = tpu.matmul %9, %11, %cst {dimension_numbers = #tpu.dot_dimension_numbers<[1], [0], [0], [1], [0, 0, 1, 1], [], []>} : vector<64x4xf32>, vector<4x8xf32>, vector<64x8xf32> -> vector<64x8xf32>
    %13 = vector.extract_strided_slice %3 {offsets = [0, 0, 0], sizes = [8, 8, 4], strides = [1, 1, 1]} : vector<9x9x4xf32> to vector<8x8x4xf32>
    %14 = vector.shape_cast %13 : vector<8x8x4xf32> to vector<64x4xf32>
    %c1_19 = arith.constant 1 : index
    %c0_20 = arith.constant 0 : index
    %c0_21 = arith.constant 0 : index
    %15 = vector.load %arg2[%c1_19, %c0_20, %c0_21] : memref<9x4x8xf32, #tpu.memory_space<vmem>>, vector<1x4x8xf32>
    %16 = vector.shape_cast %15 : vector<1x4x8xf32> to vector<4x8xf32>
    %cst_22 = arith.constant dense<0.000000e+00> : vector<64x8xf32>
    %17 = tpu.matmul %14, %16, %cst_22 {dimension_numbers = #tpu.dot_dimension_numbers<[1], [0], [0], [1], [0, 0, 1, 1], [], []>} : vector<64x4xf32>, vector<4x8xf32>, vector<64x8xf32> -> vector<64x8xf32>
    %18 = arith.addf %12, %17 : vector<64x8xf32>
    %19 = vector.extract_strided_slice %1 {offsets = [0, 1, 0], sizes = [8, 8, 4], strides = [1, 1, 1]} : vector<9x9x4xf32> to vector<8x8x4xf32>
    %20 = vector.shape_cast %19 : vector<8x8x4xf32> to vector<64x4xf32>
    %c2_23 = arith.constant 2 : index
    %c0_24 = arith.constant 0 : index
    %c0_25 = arith.constant 0 : index
    %21 = vector.load %arg2[%c2_23, %c0_24, %c0_25] : memref<9x4x8xf32, #tpu.memory_space<vmem>>, vector<1x4x8xf32>
    %22 = vector.shape_cast %21 : vector<1x4x8xf32> to vector<4x8xf32>
    %cst_26 = arith.constant dense<0.000000e+00> : vector<64x8xf32>
    %23 = tpu.matmul %20, %22, %cst_26 {dimension_numbers = #tpu.dot_dimension_numbers<[1], [0], [0], [1], [0, 0, 1, 1], [], []>} : vector<64x4xf32>, vector<4x8xf32>, vector<64x8xf32> -> vector<64x8xf32>
    %24 = arith.addf %18, %23 : vector<64x8xf32>
    %25 = vector.extract_strided_slice %5 {offsets = [0, 0, 0], sizes = [8, 8, 4], strides = [1, 1, 1]} : vector<9x9x4xf32> to vector<8x8x4xf32>
    %26 = vector.shape_cast %25 : vector<8x8x4xf32> to vector<64x4xf32>
    %c3_27 = arith.constant 3 : index
    %c0_28 = arith.constant 0 : index
    %c0_29 = arith.constant 0 : index
    %27 = vector.load %arg2[%c3_27, %c0_28, %c0_29] : memref<9x4x8xf32, #tpu.memory_space<vmem>>, vector<1x4x8xf32>
    %28 = vector.shape_cast %27 : vector<1x4x8xf32> to vector<4x8xf32>
    %cst_30 = arith.constant dense<0.000000e+00> : vector<64x8xf32>
    %29 = tpu.matmul %26, %28, %cst_30 {dimension_numbers = #tpu.dot_dimension_numbers<[1], [0], [0], [1], [0, 0, 1, 1], [], []>} : vector<64x4xf32>, vector<4x8xf32>, vector<64x8xf32> -> vector<64x8xf32>
    %30 = arith.addf %24, %29 : vector<64x8xf32>
    %31 = vector.extract_strided_slice %7 {offsets = [0, 0, 0], sizes = [8, 8, 4], strides = [1, 1, 1]} : vector<9x9x4xf32> to vector<8x8x4xf32>
    %32 = vector.shape_cast %31 : vector<8x8x4xf32> to vector<64x4xf32>
    %c4 = arith.constant 4 : index
    %c0_31 = arith.constant 0 : index
    %c0_32 = arith.constant 0 : index
    %33 = vector.load %arg2[%c4, %c0_31, %c0_32] : memref<9x4x8xf32, #tpu.memory_space<vmem>>, vector<1x4x8xf32>
    %34 = vector.shape_cast %33 : vector<1x4x8xf32> to vector<4x8xf32>
    %cst_33 = arith.constant dense<0.000000e+00> : vector<64x8xf32>
    %35 = tpu.matmul %32, %34, %cst_33 {dimension_numbers = #tpu.dot_dimension_numbers<[1], [0], [0], [1], [0, 0, 1, 1], [], []>} : vector<64x4xf32>, vector<4x8xf32>, vector<64x8xf32> -> vector<64x8xf32>
    %36 = arith.addf %30, %35 : vector<64x8xf32>
    %37 = vector.extract_strided_slice %5 {offsets = [0, 1, 0], sizes = [8, 8, 4], strides = [1, 1, 1]} : vector<9x9x4xf32> to vector<8x8x4xf32>
    %38 = vector.shape_cast %37 : vector<8x8x4xf32> to vector<64x4xf32>
    %c5 = arith.constant 5 : index
    %c0_34 = arith.constant 0 : index
    %c0_35 = arith.constant 0 : index
    %39 = vector.load %arg2[%c5, %c0_34, %c0_35] : memref<9x4x8xf32, #tpu.memory_space<vmem>>, vector<1x4x8xf32>
    %40 = vector.shape_cast %39 : vector<1x4x8xf32> to vector<4x8xf32>
    %cst_36 = arith.constant dense<0.000000e+00> : vector<64x8xf32>
    %41 = tpu.matmul %38, %40, %cst_36 {dimension_numbers = #tpu.dot_dimension_numbers<[1], [0], [0], [1], [0, 0, 1, 1], [], []>} : vector<64x4xf32>, vector<4x8xf32>, vector<64x8xf32> -> vector<64x8xf32>
    %42 = arith.addf %36, %41 : vector<64x8xf32>
    %43 = vector.extract_strided_slice %1 {offsets = [1, 0, 0], sizes = [8, 8, 4], strides = [1, 1, 1]} : vector<9x9x4xf32> to vector<8x8x4xf32>
    %44 = vector.shape_cast %43 : vector<8x8x4xf32> to vector<64x4xf32>
    %c6 = arith.constant 6 : index
    %c0_37 = arith.constant 0 : index
    %c0_38 = arith.constant 0 : index
    %45 = vector.load %arg2[%c6, %c0_37, %c0_38] : memref<9x4x8xf32, #tpu.memory_space<vmem>>, vector<1x4x8xf32>
    %46 = vector.shape_cast %45 : vector<1x4x8xf32> to vector<4x8xf32>
    %cst_39 = arith.constant dense<0.000000e+00> : vector<64x8xf32>
    %47 = tpu.matmul %44, %46, %cst_39 {dimension_numbers = #tpu.dot_dimension_numbers<[1], [0], [0], [1], [0, 0, 1, 1], [], []>} : vector<64x4xf32>, vector<4x8xf32>, vector<64x8xf32> -> vector<64x8xf32>
    %48 = arith.addf %42, %47 : vector<64x8xf32>
    %49 = vector.extract_strided_slice %3 {offsets = [1, 0, 0], sizes = [8, 8, 4], strides = [1, 1, 1]} : vector<9x9x4xf32> to vector<8x8x4xf32>
    %50 = vector.shape_cast %49 : vector<8x8x4xf32> to vector<64x4xf32>
    %c7 = arith.constant 7 : index
    %c0_40 = arith.constant 0 : index
    %c0_41 = arith.constant 0 : index
    %51 = vector.load %arg2[%c7, %c0_40, %c0_41] : memref<9x4x8xf32, #tpu.memory_space<vmem>>, vector<1x4x8xf32>
    %52 = vector.shape_cast %51 : vector<1x4x8xf32> to vector<4x8xf32>
    %cst_42 = arith.constant dense<0.000000e+00> : vector<64x8xf32>
    %53 = tpu.matmul %50, %52, %cst_42 {dimension_numbers = #tpu.dot_dimension_numbers<[1], [0], [0], [1], [0, 0, 1, 1], [], []>} : vector<64x4xf32>, vector<4x8xf32>, vector<64x8xf32> -> vector<64x8xf32>
    %54 = arith.addf %48, %53 : vector<64x8xf32>
    %55 = vector.extract_strided_slice %1 {offsets = [1, 1, 0], sizes = [8, 8, 4], strides = [1, 1, 1]} : vector<9x9x4xf32> to vector<8x8x4xf32>
    %56 = vector.shape_cast %55 : vector<8x8x4xf32> to vector<64x4xf32>
    %c8 = arith.constant 8 : index
    %c0_43 = arith.constant 0 : index
    %c0_44 = arith.constant 0 : index
    %57 = vector.load %arg2[%c8, %c0_43, %c0_44] : memref<9x4x8xf32, #tpu.memory_space<vmem>>, vector<1x4x8xf32>
    %58 = vector.shape_cast %57 : vector<1x4x8xf32> to vector<4x8xf32>
    %cst_45 = arith.constant dense<0.000000e+00> : vector<64x8xf32>
    %59 = tpu.matmul %56, %58, %cst_45 {dimension_numbers = #tpu.dot_dimension_numbers<[1], [0], [0], [1], [0, 0, 1, 1], [], []>} : vector<64x4xf32>, vector<4x8xf32>, vector<64x8xf32> -> vector<64x8xf32>
    %60 = arith.addf %54, %59 : vector<64x8xf32>
    %cst_46 = arith.constant dense<0.000000e+00> : vector<8xf32>
    %61 = vector.multi_reduction <add>, %60, %cst_46 [0] : vector<64x8xf32> to vector<8xf32>
    %62 = vector.shape_cast %61 : vector<8xf32> to vector<1x8xf32>
    %c0_47 = arith.constant 0 : index
    %c0_48 = arith.constant 0 : index
    %c0_49 = arith.constant 0 : index
    %63 = vector.load %arg3[%c0_47, %c0_48, %c0_49] : memref<1x1x8xf32, #tpu.memory_space<vmem>>, vector<1x1x8xf32>
    %64 = vector.shape_cast %63 : vector<1x1x8xf32> to vector<1x8xf32>
    %65 = vector.shape_cast %62 : vector<1x8xf32> to vector<1x1x8xf32>
    tpu.vector_store %arg3[%c0_47, %c0_48, %c0_49], %65 {strides = array<i32>} : memref<1x1x8xf32, #tpu.memory_space<vmem>>, vector<1x1x8xf32>,
    %66 = arith.mulf %60, %60 : vector<64x8xf32>
    %cst_50 = arith.constant dense<0.000000e+00> : vector<8xf32>
    %67 = vector.multi_reduction <add>, %66, %cst_50 [0] : vector<64x8xf32> to vector<8xf32>
    %68 = vector.shape_cast %67 : vector<8xf32> to vector<1x8xf32>
    %c0_51 = arith.constant 0 : index
    %c0_52 = arith.constant 0 : index
    %c0_53 = arith.constant 0 : index
    %69 = vector.load %arg4[%c0_51, %c0_52, %c0_53] : memref<1x1x8xf32, #tpu.memory_space<vmem>>, vector<1x1x8xf32>
    %70 = vector.shape_cast %69 : vector<1x1x8xf32> to vector<1x8xf32>
    %71 = vector.shape_cast %68 : vector<1x8xf32> to vector<1x1x8xf32>
    tpu.vector_store %arg4[%c0_51, %c0_52, %c0_53], %71 {strides = array<i32>} : memref<1x1x8xf32, #tpu.memory_space<vmem>>, vector<1x1x8xf32>,
    return
  }
  func.func @transform_0(%arg0: i32) -> (i32, i32, i32, i32, i32) {
    %c0_i32 = arith.constant 0 : i32
    %c0_i32_0 = arith.constant 0 : i32
    %c0_i32_1 = arith.constant 0 : i32
    %c0_i32_2 = arith.constant 0 : i32
    %c0_i32_3 = arith.constant 0 : i32
    return %arg0, %c0_i32, %c0_i32_0, %c0_i32_1, %c0_i32_2 : i32, i32, i32, i32, i32
  }
  func.func @transform_1(%arg0: i32) -> (i32, i32, i32) {
    %c0_i32 = arith.constant 0 : i32
    %c0_i32_0 = arith.constant 0 : i32
    %c0_i32_1 = arith.constant 0 : i32
    %c0_i32_2 = arith.constant 0 : i32
    return %c0_i32, %c0_i32_0, %c0_i32_1 : i32, i32, i32
  }
  func.func @transform_2(%arg0: i32) -> (i32, i32, i32) {
    %c0_i32 = arith.constant 0 : i32
    %c0_i32_0 = arith.constant 0 : i32
    %c0_i32_1 = arith.constant 0 : i32
    return %arg0, %c0_i32, %c0_i32_0 : i32, i32, i32
  }
  func.func @transform_3(%arg0: i32) -> (i32, i32, i32) {
    %c0_i32 = arith.constant 0 : i32
    %c0_i32_0 = arith.constant 0 : i32
    %c0_i32_1 = arith.constant 0 : i32
    return %arg0, %c0_i32, %c0_i32_0 : i32, i32, i32
  }
}

</mosaic_0001>

<bundles_post_ra>
// kernel: tpu_custom_call.1
= control target key start
LH: loop header
LB: loop body
LE: loop exit
PB: predicated region body
PF: predicated region fallthrough
CT: control target
= control target key end

     0   :  { %9 = vsyncpa [#allocation3], 0  ;;  %s2633_s0 = inlined_call_operand.vmem [shape: f32[2,4,9,9,4], index: 0, kind: input, shape index: {}]   ;;  %s2634_s1 = inlined_call_operand.vmem [shape: f32[9,4,8], index: 1, kind: input, shape index: {}]   ;;  %s2635_s2 = inlined_call_operand.hbm [shape: f32[2,1,8], index: 2, kind: output, shape index: {0}]   ;;  %s2636_s3 = inlined_call_operand.hbm [shape: f32[2,1,8], index: 3, kind: output, shape index: {1}]  }
   0x1   :  { %11 = vsyncpa [#allocation3 + $0x1], 0 }
   0x2   :  { %12 = vsyncpa [#allocation5], 0 }
   0x3   :  { %14 = vsyncpa [#allocation5 + $0x1], 0  ;;  %s2218_s12 = smov 0   ;;  %s2220_s13 = smov 0  }
   0x4   :  { %s2222_s14 = smov 0   ;;  %s2224_s15 = smov 0  }
   0x5 LB: > { %s2239_s16 = sadd.s32 4294967295, %s2194_s15   ;;  %s1651_s17 = sadd.s32 4294967294, %s2194_s15   ;;  %s2194_s15 = sphi %s2224_s15, %s2642_s15   ;;  %s2190_s14 = sphi %s2222_s14, %s2641_s14   ;;  %s2186_s13 = sphi %s2220_s13, %s2640_s13   ;;  %s2182_s12 = sphi %s2218_s12, %s2639_s12  }
   0x6   : > { %s2243_s18 = sadd.s32 1, %s2194_s15   ;;  %s74_s19 = sadd.s32 1, %s2190_s14 }
   0x7   : > { %s71_s20 = ssub.s32 %s2194_s15, %s2243_s18  ;;  %p84_p0 = scmp.ne.s32.totalorder %s2190_s14, %s2186_s13 }
   0x8   : > { %p72_p1 = scmp.eq.s32.totalorder %s71_s20, 0  ;;  %p85_p2 = scmp.eq.s32.totalorder %s2239_s16, 1 }
   0x9   : > { %p90_p3 = scmp.ne.s32.totalorder %s2186_s13, %s2182_s12  ;;  %p91_p4 = scmp.eq.s32.totalorder %s1651_s17, 1 }
   0xa   : > { %s2254_s21 = scalar_select %p72_p1, %s2190_s14, %s74_s19  }
   0xb   : > { %p2256_p5 = por %p85_p2, %p84_p0  ;;  %p2260_p6 = por %p91_p4, %p90_p3 }
   0xc   : > { %p1654_p7 = scmp.ge.s32.totalorder %s2194_s15, 1  ;;  %p146_p8 = scmp.lt.s32.totalorder %s2194_s15, 3 }
   0xe   : > { %p147_p9 = pnand %p1654_p7, %p146_p8 }
   0xf   : > { %v1689_v0 = vld [vmem:[%s2634_s1 + $0x4] sm:$0xf] (!%p147_p9)  ;;  %vm260_vm0 = vcmask (!%p147_p9), 1043456   ;;  %v2272_v1 = vld [vmem:[%s2634_s1 + $0x10] sm:$0xf] (!%p147_p9)  ;;  %p173_p10 = scmp.lt.s32.totalorder (!%p147_p9), %s2239_s16, 1 }
  0x10   : > { %150 = sbr.rel (%p147_p9) target bundleno = 368 (0x170), region = 28  ;;  %1863 = vmatprep.subr.msk.mxu1 (!%p147_p9), %vm260_vm0, %v1689_v0  ;;  %1919 = vmatprep.subr.msk.mxu0 (!%p147_p9), %vm260_vm0, %v2272_v1  ;;  %v232_v2 = vld [vmem:[%s2634_s1] sm:$0xf] (!%p147_p9)  ;;  %v1738_v3 = vld [vmem:[%s2634_s1 + $0x14] sm:$0xf] (!%p147_p9)  ;;  %vm235_vm1 = vcmask (!%p147_p9), 31744  }
  0x11   : > { %1864 = vmatpush3.msk.msra.mxu1 (!%p147_p9), %vm260_vm0, %v1689_v0  ;;  %1920 = vmatpush3.msk.msra.mxu0 (!%p147_p9), %vm260_vm0, %v2272_v1  ;;  %v1748_v11 = vld [vmem:[%s2634_s1 + $0x18] sm:$0xf] (!%p147_p9)  ;;  %v2319_v12 = vld [vmem:[%s2634_s1 + $0x8] sm:$0xf] (!%p147_p9)  ;;  %vm509_vm2 = vcmask (!%p147_p9), 1046528   ;;  %vm1484_vm3 = vcmask (!%p147_p9), 64512  }
  0x12   : > { %1877 = vmatprep.subr.msk.mxu1 (!%p147_p9), %vm260_vm0, %v232_v2  ;;  %1933 = vmatprep.subr.msk.mxu0 (!%p147_p9), %vm260_vm0, %v1738_v3  ;;  %v1758_v42 = vld [vmem:[%s2634_s1 + $0x1c] sm:$0xf] (!%p147_p9)  ;;  %v1718_v61 = vld [vmem:[%s2634_s1 + $0xc] sm:$0xf] (!%p147_p9)  ;;  %s2547_s29 = sand.u32 (!%p147_p9), 1, %s2186_s13   ;;  %s1778_s30 = sshll.u32 (!%p147_p9), %s2239_s16, 4 }
  0x13   : > { %s166_s4 = scalar_lea.vmem (!%p147_p9), [#allocation2], %s2547_s29  ;;  %vm1506_vm4 = vcmask (!%p147_p9), 57344   ;;  %s2557_s10 = scalar_lea.hbm (!%p147_p9), %s2635_s2, %s1778_s30 }
  0x14   : > { %s2565_s17 = scalar_lea.hbm (!%p147_p9), %s2636_s3, %s1778_s30  ;;  %s1539_s19 = scalar_lea.sflag (!%p147_p9), [#allocation3], %s2547_s29 }
  0x15   : > { %s2196_s24 = smov (!%p147_p9), [#allocation2]  }
  0x16   : > { %s2104_s25 = sshll.u32 (!%p147_p9), %s2196_s24, 4  ;;  %s2105_s25 = int_to_ptr.vmem [resolvable:$false] %s2104_s25 }
  0x17   : > { %s174_s5 = scalar_select %p173_p10, %s2239_s16, 1 }
  0x18   : > { %s2106_s26 = scalar_lea.vmem %s2105_s25, 32 }
  0x19   : > { %s2055_s6 = smul.u32 576, %s174_s5  ;;  %s1555_s5 = sshll.u32 %s166_s4, 4  ;;  %s2559_s5 = int_to_ptr.vmem [resolvable:$true] %s1555_s5 }
  0x1a   : > { %s2100_s20 = scalar_lea.vmem %s2559_s5, 16  ;;  %p2107_p0 = scmp.lt.s32.totalorder %s2559_s5, %s2105_s25 }
  0x1b   : > { %s2293_s9 = scalar_lea.vmem %s2633_s0, %s2055_s6  ;;  %s172_s6 = scalar_lea.vmem [#allocation4], %s2547_s29 }
  0x1c   : > { %v1656_v4 = vld [vmem:[%s2293_s9 + $0x90] sm:$0xff]  ;;  %v2298_v6 = vld [vmem:[%s2293_s9 + $0xa0] sm:$0xff]  ;;  %v1666_v15 = vld [vmem:[%s2293_s9 + $0x128] sm:$0x1]  ;;  %s1568_s7 = sshll.u32 %s172_s6, 4  ;;  %p2101_p11 = scmp.ne.s32.totalorder %s2559_s5, %s2100_s20  ;;  %s2567_s7 = int_to_ptr.vmem [resolvable:$true] %s1568_s7 }
  0x1d   : > { %v1681_v5 = vld [vmem:[%s2293_s9 + $0x1b0] sm:$0xff]  ;;  %1865 = vmatprep.mubr.msk.f32.mxu1 %vm235_vm1, %v1656_v4  ;;  %v1682_v7 = vld [vmem:[%s2293_s9 + $0x1c0] sm:$0xff]  ;;  %v961_v18 = vrot.slane %v1666_v15, 1  ;;  %v1668_v20 = vld [vmem:[%s2293_s9 + $0x138] sm:$0x1]  ;;  %p2108_p1 = scmp.lt.s32.totalorder %s2106_s26, %s2100_s20 }
  0x1e   : > { %1921 = vmatprep.mubr.msk.f32.mxu0 %vm235_vm1, %v1681_v5  ;;  %v2304_v8 = vld [vmem:[%s2293_s9 + $0xb0] sm:$0xff]  ;;  %1866 = vmatmul.mubr.msk.f32.vlgmr.msra.gmra.mrb[0].mxu1 %vm235_vm1, %v2298_v6  ;;  %v2311_v10 = vld [vmem:[%s2293_s9 + $0xc0] sm:$0xff]  ;;  %v964_v22 = vrot.slane %v1668_v20, 1  ;;  %v1670_v24 = vld [vmem:[%s2293_s9 + $0x148] sm:$0x1]  ;;  %p2102_p12 = pnand %p2101_p11, %p2256_p5 }
  0x1f   : > { %v1683_v9 = vld [vmem:[%s2293_s9 + $0x1d0] sm:$0xff]  ;;  %1922 = vmatmul.mubr.msk.f32.vlgmr.msra.gmra.mrb[0].mxu0 %vm235_vm1, %v1682_v7  ;;  %1878 = vmatpush3.msk.msra.mxu1 %vm260_vm0, %v232_v2  ;;  %v1684_v13 = vld [vmem:[%s2293_s9 + $0x1e0] sm:$0xff]  ;;  %v967_v27 = vrot.slane %v1670_v24, 1  ;;  %v1672_v29 = vld [vmem:[%s2293_s9 + $0x158] sm:$0x1]  ;;  %p2109_p2 = por %p2108_p1, %p2107_p0 }
  0x20   : > { %1934 = vmatpush3.msk.msra.mxu0 %vm260_vm0, %v1738_v3  ;;  %v2325_v14 = vld [vmem:[%s2293_s9 + $0x120] sm:$0xff]  ;;  %1868 = vmatprep.mubr.msk.f32.mxu1 %vm235_vm1, %v2304_v8  ;;  %v2332_v16 = vld [vmem:[%s2293_s9 + $0xd0] sm:$0xff]  ;;  %v970_v33 = vrot.slane %v1672_v29, 1  ;;  %v1674_v35 = vld [vmem:[%s2293_s9 + $0x168] sm:$0x1]  ;;  %p2103_p13 = pneg %p2102_p12 }
  0x21   : > { %1924 = vmatprep.mubr.msk.f32.mxu0 %vm235_vm1, %v1683_v9  ;;  %v960_v17 = vrot.slane %v2325_v14, 1  ;;  %v2336_v19 = vld [vmem:[%s2293_s9 + $0x130] sm:$0xff]  ;;  %1947 = vmatprep.subr.msk.mxu0 %vm260_vm0, %v1748_v11  ;;  %v2342_v23 = vld [vmem:[%s2293_s9 + $0x140] sm:$0xff]  ;;  %v973_v38 = vrot.slane %v1674_v35, 1  ;;  %v1676_v40 = vld [vmem:[%s2293_s9 + $0x178] sm:$0x1] }
  0x22   : > { %v963_v21 = vrot.slane %v2336_v19, 1  ;;  %1891 = vmatprep.subr.msk.mxu1 %vm260_vm0, %v2319_v12  ;;  %1869 = vmatmul.mubr.msk.f32.gmra.mrb[2].mxu1 %vm235_vm1, %v2311_v10  ;;  %v966_v26 = vrot.slane %v2342_v23, 1  ;;  %v2353_v28 = vld [vmem:[%s2293_s9 + $0x150] sm:$0xff]  ;;  %v2360_v30 = vld [vmem:[%s2293_s9 + $0xe0] sm:$0xff]  ;;  %v1678_v44 = vld [vmem:[%s2293_s9 + $0x188] sm:$0x1]  ;;  %p2110_p3 = pnand %p2109_p2, %p2103_p13 }
  0x23   : > { %1925 = vmatmul.mubr.msk.f32.gmra.mrb[2].mxu0 %vm235_vm1, %v1684_v13  ;;  %v962_v25 = vsel %vm509_vm2, %v960_v17, %v961_v18  ;;  %1871 = vmatprep.mubr.msk.f32.mxu1 %vm235_vm1, %v2332_v16  ;;  %v969_v32 = vrot.slane %v2353_v28, 1  ;;  %v2365_v34 = vld [vmem:[%s2293_s9 + $0x160] sm:$0xff]  ;;  %v2369_v36 = vld [vmem:[%s2293_s9 + $0xf0] sm:$0xff]  ;;  %v976_v48 = vrot.slane %v1676_v40, 1  ;;  %v1680_v52 = vld [vmem:[%s2293_s9 + $0x198] sm:$0x1] }
  0x24   : > { %1935 = vmatprep.mubr.msk.f32.mxu0 %vm235_vm1, %v962_v25  ;;  %v965_v31 = vsel %vm509_vm2, %v963_v21, %v964_v22  ;;  %v972_v37 = vrot.slane %v2365_v34, 1  ;;  %v2373_v39 = vld [vmem:[%s2293_s9 + $0x170] sm:$0xff]  ;;  %v968_v41 = vsel %vm509_vm2, %v966_v26, %v967_v27  ;;  %v2384_v43 = vld [vmem:[%s2293_s9 + $0x180] sm:$0xff]  ;;  %v979_v54 = vrot.slane %v1678_v44, 1  ;;  %v179_v2 = vld [vmem:[%s2293_s9 + $0x8] sm:$0x1] }
  0x25   : > { %v2391_v45 = vld [vmem:[%s2293_s9 + $0x100] sm:$0xff]  ;;  %v971_v46 = vsel %vm509_vm2, %v969_v32, %v970_v33  ;;  %v975_v47 = vrot.slane %v2373_v39, 1  ;;  %v2399_v51 = vld [vmem:[%s2293_s9 + $0x190] sm:$0xff]  ;;  %v978_v53 = vrot.slane %v2384_v43, 1  ;;  %v982_v58 = vrot.slane %v1680_v52, 1 }
  0x26   : > { %1872 = vmatmul.mubr.msk.f32.gmra.mrb[4].mxu1 %vm235_vm1, %v2360_v30  ;;  %v178_v49 = vld [vmem:[%s2293_s9] sm:$0xff]  ;;  %v974_v50 = vsel %vm509_vm2, %v972_v37, %v973_v38  ;;  %v180_v55 = vld [vmem:[%s2293_s9 + $0x10] sm:$0xff]  ;;  %v981_v57 = vrot.slane %v2399_v51, 1  ;;  %v511_v7 = vrot.slane %v179_v2, 1  ;;  %v181_v9 = vld [vmem:[%s2293_s9 + $0x18] sm:$0x1] }
  0x27   : > { %1936 = vmatmul.mubr.msk.f32.vlgmr.msra.gmra.mrb[0].mxu0 %vm235_vm1, %v965_v31  ;;  %1874 = vmatprep.mubr.msk.f32.mxu1 %vm235_vm1, %v2369_v36  ;;  %v977_v56 = vsel %vm509_vm2, %v975_v47, %v976_v48  ;;  %v182_v59 = vld [vmem:[%s2293_s9 + $0x20] sm:$0xff]  ;;  %v980_v60 = vsel %vm509_vm2, %v978_v53, %v979_v54  ;;  %v184_v62 = vld [vmem:[%s2293_s9 + $0x30] sm:$0xff]  ;;  %v510_v4 = vrot.slane %v178_v49, 1  ;;  %v513_v13 = vrot.slane %v180_v55, 1  ;;  %v185_v22 = vld [vmem:[%s2293_s9 + $0x38] sm:$0x1] }
  0x28   : > { %1948 = vmatpush3.msk.msra.mxu0 %vm260_vm0, %v1748_v11  ;;  %1938 = vmatprep.mubr.msk.f32.mxu0 %vm235_vm1, %v968_v41  ;;  %v983_v63 = vsel %vm509_vm2, %v981_v57, %v982_v58  ;;  %v186_v0 = vld [vmem:[%s2293_s9 + $0x40] sm:$0xff]  ;;  %v188_v3 = vld [vmem:[%s2293_s9 + $0x50] sm:$0xff]  ;;  %v183_v11 = vld [vmem:[%s2293_s9 + $0x28] sm:$0x1]  ;;  %v514_v17 = vrot.slane %v181_v9, 1  ;;  %v516_v18 = vrot.slane %v182_v59, 1 }
  0x29   : > { %1961 = vmatprep.subr.msk.mxu0 %vm260_vm0, %v1758_v42  ;;  %v190_v5 = vld [vmem:[%s2293_s9 + $0x60] sm:$0xff]  ;;  %v192_v15 = vld [vmem:[%s2293_s9 + $0x70] sm:$0xff]  ;;  %v512_v20 = vsel %vm509_vm2, %v510_v4, %v511_v7  ;;  %v517_v21 = vrot.slane %v183_v11, 1  ;;  %v187_v24 = vld [vmem:[%s2293_s9 + $0x48] sm:$0x1]  ;;  %v519_v25 = vrot.slane %v184_v62, 1 }
  0x2a   : > { %1875 = vmatmul.mubr.msk.f32.gmra.mrb[6].mxu1 %vm235_vm1, %v2391_v45  ;;  %v515_v26 = vsel %vm509_vm2, %v513_v13, %v514_v17  ;;  %v520_v27 = vrot.slane %v185_v22, 1  ;;  %v522_v29 = vrot.slane %v186_v0, 1  ;;  %v523_v32 = vrot.slane %v187_v24, 1  ;;  %v189_v33 = vld [vmem:[%s2293_s9 + $0x58] sm:$0x1]  ;;  %v194_v40 = vld [vmem:[%s2293_s9 + $0x80] sm:$0xff] }
  0x2b   : > { %1939 = vmatmul.mubr.msk.f32.gmra.mrb[2].mxu0 %vm235_vm1, %v971_v46  ;;  %1879 = vmatprep.mubr.msk.f32.mxu1 %vm235_vm1, %v178_v49  ;;  %v518_v31 = vsel %vm509_vm2, %v516_v18, %v517_v21  ;;  %v191_v35 = vld [vmem:[%s2293_s9 + $0x68] sm:$0x1]  ;;  %v525_v37 = vrot.slane %v188_v3, 1  ;;  %v526_v41 = vrot.slane %v189_v33, 1  ;;  %v193_v47 = vld [vmem:[%s2293_s9 + $0x78] sm:$0x1] }
  0x2c   : > { %1941 = vmatprep.mubr.msk.f32.mxu0 %vm235_vm1, %v974_v50  ;;  %v521_v38 = vsel %vm509_vm2, %v519_v25, %v520_v27  ;;  %v524_v44 = vsel %vm509_vm2, %v522_v29, %v523_v32  ;;  %v529_v46 = vrot.slane %v191_v35, 1  ;;  %v531_v48 = vrot.slane %v192_v15, 1 }
  0x2d   : > { %v527_v49 = vsel %vm509_vm2, %v525_v37, %v526_v41  ;;  %v532_v50 = vrot.slane %v193_v47, 1 }
  0x2e   : > { %1880 = vmatmul.mubr.msk.f32.vlgmr.msra.gmra.mrb[0].mxu1 %vm235_vm1, %v180_v55 }
  0x2f   : > { %1942 = vmatmul.mubr.msk.f32.gmra.mrb[4].mxu0 %vm235_vm1, %v977_v56  ;;  %1892 = vmatpush3.msk.msra.mxu1 %vm260_vm0, %v2319_v12  ;;  %v1768_v12 = vld [vmem:[%s2634_s1 + $0x20] sm:$0xf]  ;;  %v533_v53 = vsel %vm509_vm2, %v531_v48, %v532_v50 }
  0x30   : > { %1882 = vmatprep.mubr.msk.f32.mxu1 %vm235_vm1, %v182_v59  ;;  %1944 = vmatprep.mubr.msk.f32.mxu0 %vm235_vm1, %v980_v60 }
  0x31   : > { %1905 = vmatprep.subr.msk.mxu1 %vm260_vm0, %v1718_v61 }
  0x32   : > { %1883 = vmatmul.mubr.msk.f32.gmra.mrb[2].mxu1 %vm235_vm1, %v184_v62 }
  0x33   : > { %1945 = vmatmul.mubr.msk.f32.gmra.mrb[6].mxu0 %vm235_vm1, %v983_v63  ;;  %1885 = vmatprep.mubr.msk.f32.mxu1 %vm235_vm1, %v186_v0 }
  0x34   : > { %1949 = vmatprep.mubr.msk.f32.mxu0 %vm235_vm1, %v180_v55 }
  0x36   : > { %1886 = vmatmul.mubr.msk.f32.gmra.mrb[4].mxu1 %vm235_vm1, %v188_v3 }
  0x37   : > { %1950 = vmatmul.mubr.msk.f32.vlgmr.msra.gmra.mrb[0].mxu0 %vm235_vm1, %v182_v59  ;;  %1888 = vmatprep.mubr.msk.f32.mxu1 %vm235_vm1, %v190_v5 }
  0x38   : > { %1962 = vmatpush3.msk.msra.mxu0 %vm260_vm0, %v1758_v42  ;;  %1952 = vmatprep.mubr.msk.f32.mxu0 %vm235_vm1, %v184_v62  ;;  %v528_v42 = vrot.slane %v190_v5, 1 }
  0x39   : > { %1975 = vmatprep.subr.msk.mxu0 %vm260_vm0, %v1768_v12 }
  0x3a   : > { %1889 = vmatmul.mubr.msk.f32.gmra.mrb[6].mxu1 %vm235_vm1, %v192_v15  ;;  %v530_v52 = vsel %vm509_vm2, %v528_v42, %v529_v46 }
  0x3b   : > { %1953 = vmatmul.mubr.msk.f32.gmra.mrb[2].mxu0 %vm235_vm1, %v186_v0  ;;  %1893 = vmatprep.mubr.msk.f32.mxu1 %vm235_vm1, %v512_v20 }
  0x3c   : > { %1955 = vmatprep.mubr.msk.f32.mxu0 %vm235_vm1, %v188_v3 }
  0x3e   : > { %1894 = vmatmul.mubr.msk.f32.vlgmr.msra.gmra.mrb[0].mxu1 %vm235_vm1, %v515_v26 }
  0x3f   : > { %1956 = vmatmul.mubr.msk.f32.gmra.mrb[4].mxu0 %vm235_vm1, %v190_v5  ;;  %1906 = vmatpush3.msk.msra.mxu1 %vm260_vm0, %v1718_v61 }
  0x40   : > { %1896 = vmatprep.mubr.msk.f32.mxu1 %vm235_vm1, %v518_v31  ;;  %1958 = vmatprep.mubr.msk.f32.mxu0 %vm235_vm1, %v192_v15 }
  0x41   : > { %1989 = vmatprep.subr.msk.mxu1 %vm260_vm0, %v2272_v1 }
  0x42   : > { %1897 = vmatmul.mubr.msk.f32.gmra.mrb[2].mxu1 %vm235_vm1, %v521_v38 }
  0x43   : > { %1959 = vmatmul.mubr.msk.f32.gmra.mrb[6].mxu0 %vm235_vm1, %v194_v40  ;;  %1899 = vmatprep.mubr.msk.f32.mxu1 %vm235_vm1, %v524_v44 }
  0x44   : > { %1963 = vmatprep.mubr.msk.f32.mxu0 %vm235_vm1, %v2298_v6  ;;  %v1664_v6 = vld [vmem:[%s2293_s9 + $0x110] sm:$0xff] }
  0x46   : > { %1900 = vmatmul.mubr.msk.f32.gmra.mrb[4].mxu1 %vm235_vm1, %v527_v49 }
  0x47   : > { %1964 = vmatmul.mubr.msk.f32.vlgmr.msra.gmra.mrb[0].mxu0 %vm235_vm1, %v2304_v8  ;;  %1902 = vmatprep.mubr.msk.f32.mxu1 %vm235_vm1, %v530_v52  ;;  %v195_v8 = vld [vmem:[%s2293_s9 + $0x88] sm:$0x1] }
  0x48   : > { %1976 = vmatpush3.msk.msra.mxu0 %vm260_vm0, %v1768_v12  ;;  %1966 = vmatprep.mubr.msk.f32.mxu0 %vm235_vm1, %v2311_v10  ;;  %v1361_v10 = vrot.slane %v194_v40, 1 }
  0x4a   : > { %1903 = vmatmul.mubr.msk.f32.gmra.mrb[6].mxu1 %vm235_vm1, %v533_v53 }
  0x4b   : > { %1967 = vmatmul.mubr.msk.f32.gmra.mrb[2].mxu0 %vm235_vm1, %v2332_v16  ;;  %1907 = vmatprep.mubr.msk.f32.mxu1 %vm235_vm1, %v2325_v14  ;;  %v1686_v14 = vld [vmem:[%s2293_s9 + $0x200] sm:$0xff]  ;;  %v1362_v16 = vrot.slane %v195_v8, 1 }
  0x4c   : > { %1969 = vmatprep.mubr.msk.f32.mxu0 %vm235_vm1, %v2360_v30 }
  0x4e   : > { %1908 = vmatmul.mubr.msk.f32.vlgmr.msra.gmra.mrb[0].mxu1 %vm235_vm1, %v2336_v19  ;;  %v1687_v19 = vld [vmem:[%s2293_s9 + $0x210] sm:$0xff] }
  0x4f   : > { %1970 = vmatmul.mubr.msk.f32.gmra.mrb[4].mxu0 %vm235_vm1, %v2369_v36  ;;  %1990 = vmatpush3.msk.msra.mxu1 %vm260_vm0, %v2272_v1  ;;  %v1685_v1 = vld [vmem:[%s2293_s9 + $0x1f0] sm:$0xff] }
  0x50   : > { %1910 = vmatprep.mubr.msk.f32.mxu1 %vm235_vm1, %v2342_v23  ;;  %1972 = vmatprep.mubr.msk.f32.mxu0 %vm235_vm1, %v2391_v45  ;;  %v1688_v23 = vld [vmem:[%s2293_s9 + $0x220] sm:$0xff] }
  0x52   : > { %1911 = vmatmul.mubr.msk.f32.gmra.mrb[2].mxu1 %vm235_vm1, %v2353_v28  ;;  %v1363_v28 = vsel %vm509_vm2, %v1361_v10, %v1362_v16 }
  0x53   : > { %1973 = vmatmul.mubr.msk.f32.gmra.mrb[6].mxu0 %vm235_vm1, %v1664_v6  ;;  %1913 = vmatprep.mubr.msk.f32.mxu1 %vm235_vm1, %v2365_v34 }
  0x54   : > { %1977 = vmatprep.mubr.msk.f32.mxu0 %vm235_vm1, %v515_v26 }
  0x56   : > { %1914 = vmatmul.mubr.msk.f32.gmra.mrb[4].mxu1 %vm235_vm1, %v2373_v39 }
  0x57   : > { %1978 = vmatmul.mubr.msk.f32.vlgmr.msra.gmra.mrb[0].mxu0 %vm235_vm1, %v518_v31  ;;  %1916 = vmatprep.mubr.msk.f32.mxu1 %vm235_vm1, %v2384_v43 }
  0x58   : > { %1980 = vmatprep.mubr.msk.f32.mxu0 %vm235_vm1, %v521_v38 }
  0x5a   : > { %1917 = vmatmul.mubr.msk.f32.gmra.mrb[6].mxu1 %vm235_vm1, %v2399_v51 }
  0x5b   : > { %1981 = vmatmul.mubr.msk.f32.gmra.mrb[2].mxu0 %vm235_vm1, %v524_v44  ;;  %1927 = vmatprep.mubr.msk.f32.mxu1 %vm235_vm1, %v1685_v1 }
  0x5c   : > { %1983 = vmatprep.mubr.msk.f32.mxu0 %vm235_vm1, %v527_v49 }
  0x5e   : > { %1928 = vmatmul.mubr.msk.f32.vlgmr.msra.gmra.mrb[4].mxu1 %vm235_vm1, %v1686_v14 }
  0x5f   : > { %1984 = vmatmul.mubr.msk.f32.gmra.mrb[4].mxu0 %vm235_vm1, %v530_v52  ;;  %1930 = vmatprep.mubr.msk.f32.mxu1 %vm235_vm1, %v1687_v19 }
  0x60   : > { %1986 = vmatprep.mubr.msk.f32.mxu0 %vm235_vm1, %v533_v53 }
  0x62   : > { %1931 = vmatmul.mubr.msk.f32.gmra.mrb[6].mxu1 %vm235_vm1, %v1688_v23 }
  0x63   : > { %1987 = vmatmul.mubr.msk.f32.gmra.mrb[6].mxu0 %vm235_vm1, %v1363_v28 }
 0x121   : > { %v1909_v30 = vpop.f32.mrb[0].mxu1 }
 0x122   : > { %v763_v34 = vpop.f32.mrb[1].mxu1 }
 0x125   : > { %v1912_v36 = vpop.f32.mrb[2].mxu1 }
 0x126   : > { %v773_v39 = vpop.f32.mrb[3].mxu1 }
 0x12a   : > { %v1979_v43 = vpop.f32.mrb[0].mxu0 }
 0x12b   : > { %v1991_v45 = vadd.f32 %v1979_v43, %v1909_v30  ;;  %v1437_v51 = vpop.f32.mrb[1].mxu0 }
 0x12c   : > { %v1992_v54 = vadd.f32 %v1437_v51, %v763_v34 }
 0x12d   : > { %v1486_v55 = vsel %vm1484_vm3, %v1991_v45, 0.0  ;;  %v1509_v56 = vmul.f32 %v1991_v45, %v1991_v45 }
 0x12e   : > { %v1485_v57 = vsel %vm1484_vm3, %v1992_v54, 0.0  ;;  %v1508_v58 = vmul.f32 %v1992_v54, %v1992_v54  ;;  %v1982_v59 = vpop.f32.mrb[2].mxu0 }
 0x12f   : > { %v1517_v60 = vsel %vm1484_vm3, %v1509_v56, 0.0  ;;  %v1487_v61 = vadd.f32 %v1486_v55, %v1485_v57  ;;  %v1993_v62 = vadd.f32 %v1982_v59, %v1912_v36  ;;  %v1447_v63 = vpop.f32.mrb[3].mxu0 }
 0x130   : > { %v1516_v0 = vsel %vm1484_vm3, %v1508_v58, 0.0  ;;  %v1994_v2 = vadd.f32 %v1447_v63, %v773_v39 }
 0x131   : > { %v1518_v3 = vadd.f32 %v1517_v60, %v1516_v0  ;;  %v1511_v4 = vmul.f32 %v1993_v62, %v1993_v62  ;;  %v1929_v9 = vpop.f32.mrb[4].mxu1  ;;  %v1490_v18 = vsel %vm1484_vm3, %v1993_v62, 0.0 }
 0x132   : > { %v1488_v5 = vsel %vm1484_vm3, %v1994_v2, 0.0  ;;  %v1510_v7 = vmul.f32 %v1994_v2, %v1994_v2  ;;  %v1985_v11 = vpop.f32.mrb[4].mxu0  ;;  %v925_v15 = vpop.f32.mrb[5].mxu1 }
 0x133   : > { %v1489_v12 = vadd.f32 %v1488_v5, %v1487_v61  ;;  %v1995_v13 = vadd.f32 %v1985_v11, %v1929_v9  ;;  %v1457_v17 = vpop.f32.mrb[5].mxu0  ;;  %v1521_v25 = vsel %vm1484_vm3, %v1511_v4, 0.0 }
 0x134   : > { %v1519_v20 = vsel %vm1484_vm3, %v1510_v7, 0.0  ;;  %v1996_v21 = vadd.f32 %v1457_v17, %v925_v15 }
 0x135   : > { %v1520_v22 = vadd.f32 %v1519_v20, %v1518_v3  ;;  %v1491_v24 = vadd.f32 %v1490_v18, %v1489_v12  ;;  %v1513_v26 = vmul.f32 %v1995_v13, %v1995_v13  ;;  %v1932_v31 = vpop.f32.mrb[6].mxu1  ;;  %v1494_v41 = vsel %vm1484_vm3, %v1995_v13, 0.0 }
 0x136   : > { %v1492_v27 = vsel %vm1484_vm3, %v1996_v21, 0.0  ;;  %v1512_v29 = vmul.f32 %v1996_v21, %v1996_v21  ;;  %v1988_v32 = vpop.f32.mrb[6].mxu0  ;;  %v935_v38 = vpop.f32.mrb[7].mxu1 }
 0x137   : > { %v1493_v33 = vadd.f32 %v1492_v27, %v1491_v24  ;;  %v1522_v35 = vadd.f32 %v1521_v25, %v1520_v22  ;;  %v1997_v37 = vadd.f32 %v1988_v32, %v1932_v31  ;;  %v1467_v40 = vpop.f32.mrb[7].mxu0  ;;  %v1525_v48 = vsel %vm1484_vm3, %v1513_v26, 0.0 }
 0x138   : > { %v1523_v42 = vsel %vm1484_vm3, %v1512_v29, 0.0  ;;  %v1998_v44 = vadd.f32 %v1467_v40, %v935_v38 }
 0x139   : > { %v1524_v46 = vadd.f32 %v1523_v42, %v1522_v35  ;;  %v1495_v47 = vadd.f32 %v1494_v41, %v1493_v33  ;;  %v1515_v49 = vmul.f32 %v1997_v37, %v1997_v37  ;;  %v1498_v1 = vsel %vm1484_vm3, %v1997_v37, 0.0 }
 0x13a   : > { %v1496_v50 = vsel %vm1484_vm3, %v1998_v44, 0.0  ;;  %v1514_v52 = vmul.f32 %v1998_v44, %v1998_v44 }
 0x13b   : > { %v1497_v53 = vadd.f32 %v1496_v50, %v1495_v47  ;;  %v1526_v6 = vadd.f32 %v1525_v48, %v1524_v46  ;;  %v1529_v16 = vsel %vm1484_vm3, %v1515_v49, 0.0 }
 0x13c   : > { %v1527_v8 = vsel %vm1484_vm3, %v1514_v52, 0.0 }
 0x13d   : > { %v1499_v10 = vadd.f32 %v1498_v1, %v1497_v53  ;;  %v1528_v14 = vadd.f32 %v1527_v8, %v1526_v6 }
 0x13f   : > { %v1500_v19 = vrot.slane %v1499_v10, 4  ;;  %v1530_v23 = vadd.f32 %v1529_v16, %v1528_v14 }
 0x141   : > { %v1501_v28 = vadd.f32 %v1500_v19, %v1499_v10  ;;  %v1531_v30 = vrot.slane %v1530_v23, 4 }
 0x143   : > { %v1502_v34 = vrot.slane %v1501_v28, 2  ;;  %v1532_v36 = vadd.f32 %v1531_v30, %v1530_v23 }
 0x145   : > { %v1503_v39 = vadd.f32 %v1502_v34, %v1501_v28  ;;  %v1533_v43 = vrot.slane %v1532_v36, 2 }
 0x147   : > { %v1504_v45 = vrot.slane %v1503_v39, 1  ;;  %v1534_v51 = vadd.f32 %v1533_v43, %v1532_v36 }
 0x149   : > { %v1505_v54 = vadd.f32 %v1504_v45, %v1503_v39  ;;  %v1535_v55 = vrot.slane %v1534_v51, 1 }
 0x14b   : > { %1507 = vst.msk [vmem:[%s166_s4] sm:$0x1] %vm1506_vm4, %v1505_v54  ;;  %v1536_v56 = vadd.f32 %v1535_v55, %v1534_v51 }
 0x14c   : > { %2113 = shalt.err (!%p2110_p3)
}
 0x14d   : > { %s2114_s27 = scalar_lea.hbm %s2557_s10, 16  ;;  %s2118_s4 = scalar_lea.hbm %s2635_s2, 32 }
 0x14e   : > { %p2115_p4 = scmp.ne.s32.totalorder %s2557_s10, %s2114_s27  ;;  %p2119_p9 = scmp.lt.u32.totalorder %s2557_s10, %s2635_s2 }
 0x14f   : > { %p2120_p10 = scmp.lt.u32.totalorder %s2118_s4, %s2114_s27  ;;  %p2122_p12 = scmp.lt.u32.totalorder %s2114_s27, %s2557_s10 }
 0x150   : > { %p2116_p7 = pnand %p2115_p4, %p2256_p5 }
 0x151   : > { %p2121_p11 = por %p2120_p10, %p2119_p9 }
 0x152   : > { %p2117_p8 = pneg %p2116_p7 }
 0x153   : > { %p2123_p13 = por %p2122_p12, %p2121_p11 }
 0x155   : > { %p2124_p0 = pnand %p2123_p13, %p2117_p8 }
 0x157   : > { %2127 = shalt.err (!%p2124_p0)
}
 0x158   : > { %2056 = dma.vmem_to_hbm [thread:$0]  (%p2256_p5), %s2559_s5, 16, %s2557_s10, %s1539_s19   ;;  %1537 = vst.msk [vmem:[%s172_s6] sm:$0x1] %vm1506_vm4, %v1536_v56 }
 0x159   : > { %s1543_s16 = scalar_lea.sflag [#allocation5], %s2547_s29  ;;  %s2128_s11 = scalar_lea.vmem %s2567_s7, 16 }
 0x15a   : > { %p2129_p1 = scmp.ne.s32.totalorder %s2567_s7, %s2128_s11  ;;  %s2197_s20 = smov [#allocation4]  }
 0x15b   : > { %s2132_s24 = sshll.u32 %s2197_s20, 4  ;;  %s2133_s24 = int_to_ptr.vmem [resolvable:$false] %s2132_s24 }
 0x15c   : > { %p2130_p2 = pnand %p2129_p1, %p2256_p5  ;;  %s2134_s25 = scalar_lea.vmem %s2133_s24, 32 }
 0x15d   : > { %p2135_p4 = scmp.lt.s32.totalorder %s2567_s7, %s2133_s24  ;;  %p2136_p7 = scmp.lt.s32.totalorder %s2134_s25, %s2128_s11 }
 0x15e   : > { %p2131_p3 = pneg %p2130_p2 }
 0x15f   : > { %p2137_p8 = por %p2136_p7, %p2135_p4 }
 0x161   : > { %p2138_p9 = pnand %p2137_p8, %p2131_p3 }
 0x163   : > { %2141 = shalt.err (!%p2138_p9)
}
 0x164   : > { %s2142_s29 = scalar_lea.hbm %s2565_s17, 16  ;;  %s2146_s10 = scalar_lea.hbm %s2636_s3, 32 }
 0x165   : > { %p2143_p10 = scmp.ne.s32.totalorder %s2565_s17, %s2142_s29  ;;  %p2147_p13 = scmp.lt.u32.totalorder %s2565_s17, %s2636_s3 }
 0x166   : > { %p2148_p0 = scmp.lt.u32.totalorder %s2146_s10, %s2142_s29  ;;  %p2150_p2 = scmp.lt.u32.totalorder %s2142_s29, %s2565_s17 }
 0x167   : > { %p2144_p11 = pnand %p2143_p10, %p2256_p5 }
 0x168   : > { %p2149_p1 = por %p2148_p0, %p2147_p13 }
 0x169   : > { %p2145_p12 = pneg %p2144_p11 }
 0x16a   : > { %p2151_p3 = por %p2150_p2, %p2149_p1 }
 0x16c   : > { %p2152_p4 = pnand %p2151_p3, %p2145_p12 }
 0x16e   : > { %2155 = shalt.err (!%p2152_p4)
}
 0x16f   : > { %2057 = dma.vmem_to_hbm [thread:$0]  (%p2256_p5), %s2567_s7, 16, %s2565_s17, %s1543_s16  }
 0x170 PF: > { %p2067_p7 = scmp.ge.s32.totalorder %s2194_s15, 2  ;;  %s1580_s27 = sand.u32 1, %s2182_s12  }
 0x171   : > { %s1581_s28 = scalar_lea.sflag [#allocation3], %s1580_s27 }
 0x172   : > { %p2061_p8 = pnand %p2067_p7, %p2260_p6 }
 0x174   : > { %2173 = dma.done.wait (!%p2061_p8), %s1581_s28, 16  }
 0x175   : > { %2175 = vsyncadd (!%p2061_p8), %s1581_s28, 4294967280  ;;  %s1589_s30 = scalar_lea.sflag [#allocation5], %s1580_s27 }
 0x176   : > { %2177 = dma.done.wait (!%p2061_p8), %s1589_s30, 16  }
 0x177   : > { %2179 = vsyncadd (!%p2061_p8), %s1589_s30, 4294967280  ;;  %p17_p5 = scmp.ge.s32.totalorder %s2243_s18, 4   ;;  %s2639_s12 = smov %s2186_s13 }
 0x178   : > { %s2640_s13 = smov %s2190_s14  ;;  %s2641_s14 = smov %s2254_s21 }
 0x179   : > { %s2642_s15 = smov %s2243_s18  ;;  %19 = sbr.rel (!%p17_p5) target bundleno = 5 (0x5), region = 91 }
 0x180   :  { %1593 = vsyncpa [#allocation3], 1 }
 0x181   :  { %1595 = vsyncpa [#allocation3 + $0x1], 1 }
 0x182   :  { %1596 = vsyncpa [#allocation5], 1 }
 0x183   :  { %1598 = vsyncpa [#allocation5 + $0x1], 1 }

</bundles_post_ra>
